<compile_context>
chip_gen: v7x
topology: tpu7x:2x2x1
jax: 0.10.0
libtpu: 0.0.40
codegen_flags: <defaults>
</compile_context>

<pallas_src>
import math
import functools

import jax
import jax.numpy as jnp
from jax.experimental import pallas as pl
from jax.experimental.pallas import tpu as pltpu


_INV_SQRT2 = 1.0 / math.sqrt(2.0)


def _round_up(x, m):
    return ((x + m - 1) // m) * m


def _cdiv(a, b):
    return (a + b - 1) // b


def _vmem_budget_bytes():
    """~80% of physical per-core VMEM (v5e/v6e: 128 MiB, v7x: 64 MiB)."""
    try:
        cap = int(pltpu.get_tpu_info().vmem_capacity_bytes)
    except Exception:
        cap = 64 << 20  # conservative (v7x-sized) default if the query is unavailable
    return max(32 << 20, int(cap * 0.8))


def _gated_ffn_kernel(x_ref, wg_ref, wu_ref, wd_ref, o_ref, acc_ref):
    """One (row-tile, P-tile) grid step.

    gate/up projections for this P slab -> exact-GELU gating -> partial down
    projection accumulated into a resident f32 scratch; the output tile is
    written on the last P step.
    """
    p = pl.program_id(1)

    @pl.when(p == 0)
    def _():
        acc_ref[...] = jnp.zeros_like(acc_ref)

    x = x_ref[...]                                                        # (tm, E_pad), compute dtype
    gate = jnp.dot(x, wg_ref[...], preferred_element_type=jnp.float32)    # (tm, tp) f32 acc
    up = jnp.dot(x, wu_ref[...], preferred_element_type=jnp.float32)      # (tm, tp) f32 acc
    # Exact (erf) GELU to match torch.nn.functional.gelu's default form.
    act = 0.5 * gate * (1.0 + jax.lax.erf(gate * _INV_SQRT2))
    gated = (act * up).astype(wd_ref.dtype)                               # MXU input in weight dtype
    acc_ref[...] += jnp.dot(gated, wd_ref[...], preferred_element_type=jnp.float32)

    @pl.when(p == pl.num_programs(1) - 1)
    def _():
        o_ref[...] = acc_ref[...].astype(o_ref.dtype)


def prepare_weights(w_up, w_down, *, compute_dtype=jnp.bfloat16, lane=128):
    """One-time weight prep (call once at parameter init, not per forward).

    w_up:   (E, 2*P)  stored (in, out), i.e. transposed vs nn.Linear.weight
    w_down: (P, E)
    Returns (w_gate, w_up_half, w_down) padded to lane multiples and cast to
    `compute_dtype` (zero padding is mathematically exact: gelu(0)*0 == 0).
    """
    E, two_p = w_up.shape
    P, E2 = w_down.shape
    assert two_p == 2 * P and E2 == E
    E_pad = _round_up(E, lane)
    P_pad = _round_up(P, lane)
    w_gate = jnp.pad(w_up[:, :P], ((0, E_pad - E), (0, P_pad - P))).astype(compute_dtype)
    w_uph = jnp.pad(w_up[:, P:], ((0, E_pad - E), (0, P_pad - P))).astype(compute_dtype)
    w_down_p = jnp.pad(w_down, ((0, P_pad - P), (0, E_pad - E))).astype(compute_dtype)
    return w_gate, w_uph, w_down_p


@functools.partial(jax.jit, static_argnames=("tm", "single_buffer_weights"))
def _forward(x, w_gate, w_uph, w_down_p, *, tm, single_buffer_weights):
    B, S, E = x.shape
    E_pad, P_pad = w_gate.shape
    assert w_uph.shape == (E_pad, P_pad) and w_down_p.shape == (P_pad, E_pad)
    assert E_pad >= E and E_pad % 128 == 0 and P_pad % 128 == 0

    compute_dtype = w_gate.dtype
    cbytes = jnp.dtype(compute_dtype).itemsize     # compute / weight dtype bytes
    obytes = jnp.dtype(x.dtype).itemsize           # output kept in x's dtype
    M = B * S
    sub = 16 if cbytes < 4 else 8                  # bf16 sublane packing => 16-row multiples

    budget = _vmem_budget_bytes()

    # --- P tiling: weights stay resident if they fit ~half the budget, else tile P.
    tp = P_pad
    if 3 * E_pad * P_pad * cbytes > budget // 2:
        np_tiles = 1
        while (2 * 3 * E_pad * (P_pad // np_tiles) * cbytes > budget // 2
               and P_pad % (np_tiles * 2) == 0
               and (P_pad // (np_tiles * 2)) % 128 == 0):
            np_tiles *= 2
        tp = P_pad // np_tiles
    np_ = P_pad // tp

    weights_single_buffered = single_buffer_weights and np_ == 1
    w_buf = 1 if weights_single_buffered else 2

    def _footprint(tm_):
        return (2 * tm_ * E_pad * cbytes             # x tile, double-buffered
                + 2 * tm_ * E_pad * obytes           # out tile, double-buffered
                + w_buf * 3 * E_pad * tp * cbytes    # weight slabs
                + tm_ * E_pad * 4                    # f32 accumulator scratch
                + 3 * tm_ * tp * 4)                  # live f32 gate/up/act temporaries

    # --- row tile: as large as requested / fits; >=2 grid rows when possible so
    #     the "parallel" axis can shard across v7x's two TensorCores.
    tm_eff = min(_round_up(tm, sub), _round_up(M, sub))
    if _cdiv(M, tm_eff) == 1 and M > sub:
        tm_eff = _round_up(_cdiv(M, 2), sub)
    while _footprint(tm_eff) > budget and tm_eff > sub:
        tm_eff = max(sub, _round_up(tm_eff // 2, sub))
    M_pad = _round_up(M, tm_eff)
    nm = M_pad // tm_eff

    x2 = jnp.pad(x.reshape(M, E).astype(compute_dtype),
                 ((0, M_pad - M), (0, E_pad - E)))

    cost = pl.CostEstimate(
        flops=6 * M_pad * E_pad * P_pad,                     # two up dots + one down dot
        transcendentals=M_pad * P_pad,                       # advisory (erf per gate element)
        bytes_accessed=(M_pad * E_pad * cbytes + M_pad * E_pad * obytes
                        + nm * 3 * E_pad * P_pad * cbytes),
    )

    if weights_single_buffered:
        def _wspec(shape, imap):
            # Block index never changes -> no need for the default double buffer.
            return pl.BlockSpec(shape, imap, pipeline_mode=pl.Buffered(1))
    else:
        def _wspec(shape, imap):
            return pl.BlockSpec(shape, imap)

    out2 = pl.pallas_call(
        _gated_ffn_kernel,
        out_shape=jax.ShapeDtypeStruct((M_pad, E_pad), x.dtype),
        grid_spec=pltpu.PrefetchScalarGridSpec(
            num_scalar_prefetch=0,
            grid=(nm, np_),                                   # reduction axis (P) last
            in_specs=[
                pl.BlockSpec((tm_eff, E_pad), lambda i, p: (i, 0)),   # x row tile
                _wspec((E_pad, tp), lambda i, p: (0, p)),             # W_gate slab
                _wspec((E_pad, tp), lambda i, p: (0, p)),             # W_up half slab
                _wspec((tp, E_pad), lambda i, p: (p, 0)),             # W_down slab
            ],
            out_specs=pl.BlockSpec((tm_eff, E_pad), lambda i, p: (i, 0)),
            scratch_shapes=[pltpu.VMEM((tm_eff, E_pad), jnp.float32)],
        ),
        compiler_params=pltpu.CompilerParams(
            dimension_semantics=("parallel", "arbitrary"),
            vmem_limit_bytes=int(budget),
        ),
        cost_estimate=cost,
    )(x2, w_gate, w_uph, w_down_p)

    return out2[:M, :E].reshape(B, S, E)


def gated_feedforward(x, prepared_weights, *, tm=256):
    """GatedFeedForward forward pass.  `prepared_weights` from prepare_weights()."""
    w_gate, w_uph, w_down_p = prepared_weights
    try:
        return _forward(x, w_gate, w_uph, w_down_p, tm=tm, single_buffer_weights=True)
    except Exception:
        # pipeline_mode=pl.Buffered(1) not supported by this jax/libtpu combo:
        # fall back to default (double-buffered) weight BlockSpecs.
        return _forward(x, w_gate, w_uph, w_down_p, tm=tm, single_buffer_weights=False)


if __name__ == "__main__":
    # Config mirrors FeedForwardConfig: embedding_dim=64, proj_factor=1.3
    # (proj_up dim rounded to multiple of 64 -> P=128), bias=False,
    # act_fn='gelu', dropout=0.0, _num_blocks=1.
    B, S, E = 2, 8, 64
    proj_factor = 1.3
    num_blocks = 1
    P = _round_up(int(math.ceil(proj_factor * E)), 64)   # _proj_up_dim = 128

    key = jax.random.PRNGKey(0)
    kx, kup, kdown = jax.random.split(key, 3)

    # Deterministic init matching reset_parameters():
    #   small_init_: std = sqrt(2 / (5 * E)) ; wang_init_: std = 2 / num_blocks / sqrt(E)
    std_up = math.sqrt(2.0 / (5.0 * E))
    std_down = 2.0 / num_blocks / math.sqrt(E)

    # Stored as (in_features, out_features) — transposed vs torch.nn.Linear.weight.
    w_up = (std_up * jax.random.normal(kup, (E, 2 * P))).astype(jnp.float32)
    w_down = (std_down * jax.random.normal(kdown, (P, E))).astype(jnp.float32)
    x = jax.random.normal(kx, (B, S, E), dtype=jnp.float32)

    # One-time weight prep (outside the per-call hot path), bf16 compute dtype.
    weights = prepare_weights(w_up, w_down)

    out = jax.block_until_ready(gated_feedforward(x, weights))
    assert out.shape == (B, S, E)

    # Matched-precision pure-JAX reference (same bf16 operands, f32 accumulation).
    wg, wu, wd = weights
    E_pad = wg.shape[0]
    xb = jnp.pad(x.reshape(-1, E).astype(wg.dtype), ((0, 0), (0, E_pad - E)))
    gate_ref = jnp.dot(xb, wg, preferred_element_type=jnp.float32)
    up_ref = jnp.dot(xb, wu, preferred_element_type=jnp.float32)
    act_ref = 0.5 * gate_ref * (1.0 + jax.lax.erf(gate_ref * _INV_SQRT2))
    ref = jnp.dot((act_ref * up_ref).astype(wd.dtype), wd,
                  preferred_element_type=jnp.float32)
    ref = ref[:, :E].reshape(B, S, E).astype(x.dtype)

    assert jnp.allclose(out, ref, atol=2e-3, rtol=2e-3), "mismatch vs reference"

    print("KERNEL_OK")
</pallas_src>

<mosaic_0001>
module attributes {stable_mosaic.version = 11 : i64} {
  func.func @_gated_ffn_kernel(%arg0: i32, %arg1: i32, %arg2: memref<16x128xbf16, #tpu.memory_space<vmem>>, %arg3: memref<128x128xbf16, #tpu.memory_space<vmem>>, %arg4: memref<128x128xbf16, #tpu.memory_space<vmem>>, %arg5: memref<128x128xbf16, #tpu.memory_space<vmem>>, %arg6: memref<16x128xf32, #tpu.memory_space<vmem>>, %arg7: memref<16x128xf32, #tpu.memory_space<vmem>>) attributes {dimension_semantics = [#tpu.dimension_semantics<parallel>, #tpu.dimension_semantics<arbitrary>], iteration_bounds = array<i64: 1, 1>, scalar_prefetch = 0 : i64, scratch_operands = 1 : i64, tpu.core_type = #tpu.core_type<tc>, window_params = [{transform_indices = @transform_0, window_bounds = array<i64: 16, 128>}, {pipeline_mode = #tpu.pipeline_mode<synchronous>, transform_indices = @transform_1, window_bounds = array<i64: 128, 128>}, {pipeline_mode = #tpu.pipeline_mode<synchronous>, transform_indices = @transform_2, window_bounds = array<i64: 128, 128>}, {pipeline_mode = #tpu.pipeline_mode<synchronous>, transform_indices = @transform_3, window_bounds = array<i64: 128, 128>}, {transform_indices = @transform_4, window_bounds = array<i64: 16, 128>}]} {
    %c0_i32 = arith.constant 0 : i32
    %0 = arith.cmpi eq, %arg1, %c0_i32 : i32
    %1 = arith.extui %0 : i1 to i32
    %c0_i32_0 = arith.constant 0 : i32
    %2 = arith.cmpi ne, %1, %c0_i32_0 : i32
    scf.if %2 {
      %cst_19 = arith.constant 0.000000e+00 : f32
      %26 = vector.broadcast %cst_19 : f32 to vector<16x128xf32>
      %c0_20 = arith.constant 0 : index
      %c0_21 = arith.constant 0 : index
      %27 = vector.load %arg7[%c0_20, %c0_21] : memref<16x128xf32, #tpu.memory_space<vmem>>, vector<16x128xf32>
      tpu.vector_store %arg7[%c0_20, %c0_21], %26 {strides = array<i32>} : memref<16x128xf32, #tpu.memory_space<vmem>>, vector<16x128xf32>,
    } else {
    }
    %c0 = arith.constant 0 : index
    %c0_1 = arith.constant 0 : index
    %3 = vector.load %arg2[%c0, %c0_1] : memref<16x128xbf16, #tpu.memory_space<vmem>>, vector<16x128xbf16>
    %c0_2 = arith.constant 0 : index
    %c0_3 = arith.constant 0 : index
    %4 = vector.load %arg3[%c0_2, %c0_3] : memref<128x128xbf16, #tpu.memory_space<vmem>>, vector<128x128xbf16>
    %cst = arith.constant dense<0.000000e+00> : vector<16x128xf32>
    %5 = tpu.matmul %3, %4, %cst {dimension_numbers = #tpu.dot_dimension_numbers<[1], [0], [0], [1], [0, 0, 1, 1], [], []>} : vector<16x128xbf16>, vector<128x128xbf16>, vector<16x128xf32> -> vector<16x128xf32>
    %c0_4 = arith.constant 0 : index
    %c0_5 = arith.constant 0 : index
    %6 = vector.load %arg4[%c0_4, %c0_5] : memref<128x128xbf16, #tpu.memory_space<vmem>>, vector<128x128xbf16>
    %cst_6 = arith.constant dense<0.000000e+00> : vector<16x128xf32>
    %7 = tpu.matmul %3, %6, %cst_6 {dimension_numbers = #tpu.dot_dimension_numbers<[1], [0], [0], [1], [0, 0, 1, 1], [], []>} : vector<16x128xbf16>, vector<128x128xbf16>, vector<16x128xf32> -> vector<16x128xf32>
    %cst_7 = arith.constant 5.000000e-01 : f32
    %8 = vector.broadcast %cst_7 : f32 to vector<16x128xf32>
    %9 = arith.mulf %8, %5 : vector<16x128xf32>
    %cst_8 = arith.constant 0.707106769 : f32
    %10 = vector.broadcast %cst_8 : f32 to vector<16x128xf32>
    %11 = arith.mulf %5, %10 : vector<16x128xf32>
    %12 = math.erf %11 : vector<16x128xf32>
    %cst_9 = arith.constant 1.000000e+00 : f32
    %13 = vector.broadcast %cst_9 : f32 to vector<16x128xf32>
    %14 = arith.addf %13, %12 : vector<16x128xf32>
    %15 = arith.mulf %9, %14 : vector<16x128xf32>
    %16 = arith.mulf %15, %7 : vector<16x128xf32>
    %17 = arith.truncf %16 : vector<16x128xf32> to vector<16x128xbf16>
    %c0_10 = arith.constant 0 : index
    %c0_11 = arith.constant 0 : index
    %18 = vector.load %arg7[%c0_10, %c0_11] : memref<16x128xf32, #tpu.memory_space<vmem>>, vector<16x128xf32>
    %c0_12 = arith.constant 0 : index
    %c0_13 = arith.constant 0 : index
    %19 = vector.load %arg5[%c0_12, %c0_13] : memref<128x128xbf16, #tpu.memory_space<vmem>>, vector<128x128xbf16>
    %cst_14 = arith.constant dense<0.000000e+00> : vector<16x128xf32>
    %20 = tpu.matmul %17, %19, %cst_14 {dimension_numbers = #tpu.dot_dimension_numbers<[1], [0], [0], [1], [0, 0, 1, 1], [], []>} : vector<16x128xbf16>, vector<128x128xbf16>, vector<16x128xf32> -> vector<16x128xf32>
    %21 = arith.addf %18, %20 : vector<16x128xf32>
    %c0_15 = arith.constant 0 : index
    %c0_16 = arith.constant 0 : index
    %22 = vector.load %arg7[%c0_15, %c0_16] : memref<16x128xf32, #tpu.memory_space<vmem>>, vector<16x128xf32>
    tpu.vector_store %arg7[%c0_15, %c0_16], %21 {strides = array<i32>} : memref<16x128xf32, #tpu.memory_space<vmem>>, vector<16x128xf32>,
    %c0_i32_17 = arith.constant 0 : i32
    %23 = arith.cmpi eq, %arg1, %c0_i32_17 : i32
    %24 = arith.extui %23 : i1 to i32
    %c0_i32_18 = arith.constant 0 : i32
    %25 = arith.cmpi ne, %24, %c0_i32_18 : i32
    scf.if %25 {
      %c0_19 = arith.constant 0 : index
      %c0_20 = arith.constant 0 : index
      %26 = vector.load %arg7[%c0_19, %c0_20] : memref<16x128xf32, #tpu.memory_space<vmem>>, vector<16x128xf32>
      %c0_21 = arith.constant 0 : index
      %c0_22 = arith.constant 0 : index
      %27 = vector.load %arg6[%c0_21, %c0_22] : memref<16x128xf32, #tpu.memory_space<vmem>>, vector<16x128xf32>
      tpu.vector_store %arg6[%c0_21, %c0_22], %26 {strides = array<i32>} : memref<16x128xf32, #tpu.memory_space<vmem>>, vector<16x128xf32>,
    } else {
    }
    return
  }
  func.func @transform_0(%arg0: i32, %arg1: i32) -> (i32, i32) {
    %c0_i32 = arith.constant 0 : i32
    %c0_i32_0 = arith.constant 0 : i32
    return %arg0, %c0_i32 : i32, i32
  }
  func.func @transform_1(%arg0: i32, %arg1: i32) -> (i32, i32) {
    %c0_i32 = arith.constant 0 : i32
    %c0_i32_0 = arith.constant 0 : i32
    return %c0_i32, %arg1 : i32, i32
  }
  func.func @transform_2(%arg0: i32, %arg1: i32) -> (i32, i32) {
    %c0_i32 = arith.constant 0 : i32
    %c0_i32_0 = arith.constant 0 : i32
    return %c0_i32, %arg1 : i32, i32
  }
  func.func @transform_3(%arg0: i32, %arg1: i32) -> (i32, i32) {
    %c0_i32 = arith.constant 0 : i32
    %c0_i32_0 = arith.constant 0 : i32
    return %arg1, %c0_i32 : i32, i32
  }
  func.func @transform_4(%arg0: i32, %arg1: i32) -> (i32, i32) {
    %c0_i32 = arith.constant 0 : i32
    %c0_i32_0 = arith.constant 0 : i32
    return %arg0, %c0_i32 : i32, i32
  }
}

module attributes {stable_mosaic.version = 11 : i64} {
  func.func @_gated_ffn_kernel(%arg0: i32, %arg1: i32, %arg2: memref<16x128xbf16, #tpu.memory_space<vmem>>, %arg3: memref<128x128xbf16, #tpu.memory_space<vmem>>, %arg4: memref<128x128xbf16, #tpu.memory_space<vmem>>, %arg5: memref<128x128xbf16, #tpu.memory_space<vmem>>, %arg6: memref<16x128xf32, #tpu.memory_space<vmem>>, %arg7: memref<16x128xf32, #tpu.memory_space<vmem>>) attributes {dimension_semantics = [#tpu.dimension_semantics<parallel>, #tpu.dimension_semantics<arbitrary>], iteration_bounds = array<i64: 1, 1>, scalar_prefetch = 0 : i64, scratch_operands = 1 : i64, tpu.core_type = #tpu.core_type<tc>, window_params = [{transform_indices = @transform_0, window_bounds = array<i64: 16, 128>}, {transform_indices = @transform_1, window_bounds = array<i64: 128, 128>}, {transform_indices = @transform_2, window_bounds = array<i64: 128, 128>}, {transform_indices = @transform_3, window_bounds = array<i64: 128, 128>}, {transform_indices = @transform_4, window_bounds = array<i64: 16, 128>}]} {
    %c0_i32 = arith.constant 0 : i32
    %0 = arith.cmpi eq, %arg1, %c0_i32 : i32
    %1 = arith.extui %0 : i1 to i32
    %c0_i32_0 = arith.constant 0 : i32
    %2 = arith.cmpi ne, %1, %c0_i32_0 : i32
    scf.if %2 {
      %cst_19 = arith.constant 0.000000e+00 : f32
      %26 = vector.broadcast %cst_19 : f32 to vector<16x128xf32>
      %c0_20 = arith.constant 0 : index
      %c0_21 = arith.constant 0 : index
      %27 = vector.load %arg7[%c0_20, %c0_21] : memref<16x128xf32, #tpu.memory_space<vmem>>, vector<16x128xf32>
      tpu.vector_store %arg7[%c0_20, %c0_21], %26 {strides = array<i32>} : memref<16x128xf32, #tpu.memory_space<vmem>>, vector<16x128xf32>,
    } else {
    }
    %c0 = arith.constant 0 : index
    %c0_1 = arith.constant 0 : index
    %3 = vector.load %arg2[%c0, %c0_1] : memref<16x128xbf16, #tpu.memory_space<vmem>>, vector<16x128xbf16>
    %c0_2 = arith.constant 0 : index
    %c0_3 = arith.constant 0 : index
    %4 = vector.load %arg3[%c0_2, %c0_3] : memref<128x128xbf16, #tpu.memory_space<vmem>>, vector<128x128xbf16>
    %cst = arith.constant dense<0.000000e+00> : vector<16x128xf32>
    %5 = tpu.matmul %3, %4, %cst {dimension_numbers = #tpu.dot_dimension_numbers<[1], [0], [0], [1], [0, 0, 1, 1], [], []>} : vector<16x128xbf16>, vector<128x128xbf16>, vector<16x128xf32> -> vector<16x128xf32>
    %c0_4 = arith.constant 0 : index
    %c0_5 = arith.constant 0 : index
    %6 = vector.load %arg4[%c0_4, %c0_5] : memref<128x128xbf16, #tpu.memory_space<vmem>>, vector<128x128xbf16>
    %cst_6 = arith.constant dense<0.000000e+00> : vector<16x128xf32>
    %7 = tpu.matmul %3, %6, %cst_6 {dimension_numbers = #tpu.dot_dimension_numbers<[1], [0], [0], [1], [0, 0, 1, 1], [], []>} : vector<16x128xbf16>, vector<128x128xbf16>, vector<16x128xf32> -> vector<16x128xf32>
    %cst_7 = arith.constant 5.000000e-01 : f32
    %8 = vector.broadcast %cst_7 : f32 to vector<16x128xf32>
    %9 = arith.mulf %8, %5 : vector<16x128xf32>
    %cst_8 = arith.constant 0.707106769 : f32
    %10 = vector.broadcast %cst_8 : f32 to vector<16x128xf32>
    %11 = arith.mulf %5, %10 : vector<16x128xf32>
    %12 = math.erf %11 : vector<16x128xf32>
    %cst_9 = arith.constant 1.000000e+00 : f32
    %13 = vector.broadcast %cst_9 : f32 to vector<16x128xf32>
    %14 = arith.addf %13, %12 : vector<16x128xf32>
    %15 = arith.mulf %9, %14 : vector<16x128xf32>
    %16 = arith.mulf %15, %7 : vector<16x128xf32>
    %17 = arith.truncf %16 : vector<16x128xf32> to vector<16x128xbf16>
    %c0_10 = arith.constant 0 : index
    %c0_11 = arith.constant 0 : index
    %18 = vector.load %arg7[%c0_10, %c0_11] : memref<16x128xf32, #tpu.memory_space<vmem>>, vector<16x128xf32>
    %c0_12 = arith.constant 0 : index
    %c0_13 = arith.constant 0 : index
    %19 = vector.load %arg5[%c0_12, %c0_13] : memref<128x128xbf16, #tpu.memory_space<vmem>>, vector<128x128xbf16>
    %cst_14 = arith.constant dense<0.000000e+00> : vector<16x128xf32>
    %20 = tpu.matmul %17, %19, %cst_14 {dimension_numbers = #tpu.dot_dimension_numbers<[1], [0], [0], [1], [0, 0, 1, 1], [], []>} : vector<16x128xbf16>, vector<128x128xbf16>, vector<16x128xf32> -> vector<16x128xf32>
    %21 = arith.addf %18, %20 : vector<16x128xf32>
    %c0_15 = arith.constant 0 : index
    %c0_16 = arith.constant 0 : index
    %22 = vector.load %arg7[%c0_15, %c0_16] : memref<16x128xf32, #tpu.memory_space<vmem>>, vector<16x128xf32>
    tpu.vector_store %arg7[%c0_15, %c0_16], %21 {strides = array<i32>} : memref<16x128xf32, #tpu.memory_space<vmem>>, vector<16x128xf32>,
    %c0_i32_17 = arith.constant 0 : i32
    %23 = arith.cmpi eq, %arg1, %c0_i32_17 : i32
    %24 = arith.extui %23 : i1 to i32
    %c0_i32_18 = arith.constant 0 : i32
    %25 = arith.cmpi ne, %24, %c0_i32_18 : i32
    scf.if %25 {
      %c0_19 = arith.constant 0 : index
      %c0_20 = arith.constant 0 : index
      %26 = vector.load %arg7[%c0_19, %c0_20] : memref<16x128xf32, #tpu.memory_space<vmem>>, vector<16x128xf32>
      %c0_21 = arith.constant 0 : index
      %c0_22 = arith.constant 0 : index
      %27 = vector.load %arg6[%c0_21, %c0_22] : memref<16x128xf32, #tpu.memory_space<vmem>>, vector<16x128xf32>
      tpu.vector_store %arg6[%c0_21, %c0_22], %26 {strides = array<i32>} : memref<16x128xf32, #tpu.memory_space<vmem>>, vector<16x128xf32>,
    } else {
    }
    return
  }
  func.func @transform_0(%arg0: i32, %arg1: i32) -> (i32, i32) {
    %c0_i32 = arith.constant 0 : i32
    %c0_i32_0 = arith.constant 0 : i32
    return %arg0, %c0_i32 : i32, i32
  }
  func.func @transform_1(%arg0: i32, %arg1: i32) -> (i32, i32) {
    %c0_i32 = arith.constant 0 : i32
    %c0_i32_0 = arith.constant 0 : i32
    return %c0_i32, %arg1 : i32, i32
  }
  func.func @transform_2(%arg0: i32, %arg1: i32) -> (i32, i32) {
    %c0_i32 = arith.constant 0 : i32
    %c0_i32_0 = arith.constant 0 : i32
    return %c0_i32, %arg1 : i32, i32
  }
  func.func @transform_3(%arg0: i32, %arg1: i32) -> (i32, i32) {
    %c0_i32 = arith.constant 0 : i32
    %c0_i32_0 = arith.constant 0 : i32
    return %arg1, %c0_i32 : i32, i32
  }
  func.func @transform_4(%arg0: i32, %arg1: i32) -> (i32, i32) {
    %c0_i32 = arith.constant 0 : i32
    %c0_i32_0 = arith.constant 0 : i32
    return %arg0, %c0_i32 : i32, i32
  }
}

</mosaic_0001>

<bundles_post_ra>
// kernel: _forward.1
= control target key start
LH: loop header
LB: loop body
LE: loop exit
PB: predicated region body
PF: predicated region fallthrough
CT: control target
= control target key end

     0   :  { %9 = vsyncpa [#allocation4], 0  ;;  %s761_s0 = inlined_call_operand.vmem [shape: bf16[16,128], index: 0, kind: input, shape index: {}]   ;;  %s762_s1 = inlined_call_operand.hbm [shape: bf16[128,128], index: 1, kind: input, shape index: {}]   ;;  %s763_s2 = inlined_call_operand.hbm [shape: bf16[128,128], index: 2, kind: input, shape index: {}]   ;;  %s764_s3 = inlined_call_operand.hbm [shape: bf16[128,128], index: 3, kind: input, shape index: {}]   ;;  %s765_s4 = inlined_call_operand.vmem [shape: f32[16,128], index: 4, kind: output, shape index: {}]  }
   0x1   :  { %10 = vsyncpa [#allocation6], 0  ;;  %s638_s15 = smov [#allocation5]   ;;  %s639_s17 = smov [#allocation3]  }
   0x2   :  { %s30_s16 = sshll.u32 %s638_s15, 4  ;;  %s18_s18 = sshll.u32 %s639_s17, 4  ;;  %s31_s16 = int_to_ptr.vmem [resolvable:$true] %s30_s16  ;;  %s670_s18 = int_to_ptr.vmem [resolvable:$true] %s18_s18 }
   0x3   :  { %s568_s21 = scalar_lea.hbm %s763_s2, 1024 }
   0x4   :  { %p569_p0 = scmp.ne.s32.totalorder %s763_s2, %s568_s21  ;;  %p572_p1 = scmp.lt.u32.totalorder %s568_s21, %s763_s2 }
   0x6   :  { %p574_p2 = pnand %p572_p1, %p569_p0 }
   0x8   :  { %577 = shalt.err (!%p574_p2)
}
   0x9   :  { %s578_s26 = scalar_lea.vmem %s31_s16, 1024  ;;  %p583_p4 = scmp.lt.s32.totalorder %s31_s16, %s31_s16 }
   0xa   :  { %p579_p3 = scmp.ne.s32.totalorder %s31_s16, %s578_s26  ;;  %p584_p5 = scmp.lt.s32.totalorder %s578_s26, %s578_s26 }
   0xc   :  { %p585_p6 = por %p584_p5, %p583_p4 }
   0xe   :  { %p586_p7 = pnand %p585_p6, %p579_p3 }
  0x10   :  { %589 = shalt.err (!%p586_p7)
}
  0x11   :  { %s640_s27 = smov 64   ;;  %s641_s28 = smov 4  }
  0x12   :  { %36 = dma.hbm_to_vmem [thread:$0]  %s763_s2, 1024, %s31_s16, [#allocation6], %s640_s27, %s640_s27, %s641_s28  }
  0x13   :  { %s590_s7 = scalar_lea.hbm %s762_s1, 1024 }
  0x14   :  { %p591_p8 = scmp.ne.s32.totalorder %s762_s1, %s590_s7  ;;  %p594_p9 = scmp.lt.u32.totalorder %s590_s7, %s762_s1 }
  0x16   :  { %p596_p10 = pnand %p594_p9, %p591_p8 }
  0x18   :  { %599 = shalt.err (!%p596_p10)
}
  0x19   :  { %s600_s12 = scalar_lea.vmem %s670_s18, 1024  ;;  %p605_p12 = scmp.lt.s32.totalorder %s670_s18, %s670_s18 }
  0x1a   :  { %p601_p11 = scmp.ne.s32.totalorder %s670_s18, %s600_s12  ;;  %p606_p13 = scmp.lt.s32.totalorder %s600_s12, %s600_s12 }
  0x1c   :  { %p607_p0 = por %p606_p13, %p605_p12 }
  0x1e   :  { %p608_p1 = pnand %p607_p0, %p601_p11 }
  0x20   :  { %611 = shalt.err (!%p608_p1)
}
  0x21   :  { %24 = dma.hbm_to_vmem [thread:$0]  %s762_s1, 1024, %s670_s18, [#allocation4], %s640_s27, %s640_s27, %s641_s28  }
  0x22   :  { %s642_s14 = smov [#allocation7]   ;;  %s612_s19 = scalar_lea.hbm %s764_s3, 1024 }
  0x23   :  { %s42_s15 = sshll.u32 %s642_s14, 4  ;;  %p613_p2 = scmp.ne.s32.totalorder %s764_s3, %s612_s19  ;;  %s43_s15 = int_to_ptr.vmem [resolvable:$true] %s42_s15 }
  0x24   :  { %p616_p3 = scmp.lt.u32.totalorder %s612_s19, %s764_s3 }
  0x26   :  { %p618_p4 = pnand %p616_p3, %p613_p2 }
  0x28   :  { %621 = shalt.err (!%p618_p4)
}
  0x29   :  { %s622_s24 = scalar_lea.vmem %s43_s15, 1024  ;;  %p627_p6 = scmp.lt.s32.totalorder %s43_s15, %s43_s15 }
  0x2a   :  { %p623_p5 = scmp.ne.s32.totalorder %s43_s15, %s622_s24  ;;  %p628_p7 = scmp.lt.s32.totalorder %s622_s24, %s622_s24 }
  0x2c   :  { %p629_p8 = por %p628_p7, %p627_p6 }
  0x2e   :  { %p630_p9 = pnand %p629_p8, %p623_p5 }
  0x30   :  { %633 = shalt.err (!%p630_p9)
}
  0x31   :  { %48 = dma.hbm_to_vmem [thread:$0]  %s764_s3, 1024, %s43_s15, [#allocation6], %s640_s27, %s640_s27, %s641_s28  }
  0x32   :  { %634 = dma.done.wait [#allocation4], 1024  }
  0x33   :  { %635 = vsyncadd [#allocation4], 4294966272 }
  0x34   :  { %636 = dma.done.wait [#allocation6], 2048  }
  0x35   :  { %637 = vsyncadd [#allocation6], 4294965248  ;;  %v643_v0 = vmov 0.0   ;;  %vm644_vm0 = vmmov 0   ;;  %v539_v1 = vld [vmem:[#allocation3] sm:$0xff]   ;;  %v540_v2 = vld [vmem:[#allocation3 + $0x8] sm:$0xff]  }
  0x36   :  { %472 = vmatprep.subr.bf16.mxu0 %v643_v0  ;;  %492 = vmatprep.subr.bf16.mxu1 %v643_v0  ;;  %v543_v3 = vld [vmem:[#allocation5] sm:$0xff]   ;;  %v541_v4 = vld [vmem:[#allocation3 + $0x10] sm:$0xff]   ;;  %v545_v5 = vld [vmem:[#allocation5 + $0x8] sm:$0xff]  }
  0x37   :  { %488 = vmatprep.mubr.msk.bf16.mxu0 %vm644_vm0, %v643_v0  ;;  %508 = vmatprep.mubr.msk.bf16.mxu1 %vm644_vm0, %v643_v0  ;;  %v542_v6 = vld [vmem:[#allocation3 + $0x18] sm:$0xff]   ;;  %v547_v7 = vld [vmem:[#allocation5 + $0x10] sm:$0xff]   ;;  %v544_v8 = vld [vmem:[#allocation3 + $0x20] sm:$0xff]  }
  0x38   :  { %473 = vmatpush3.bf16.msra.mxu0 %v539_v1  ;;  %493 = vmatpush3.bf16.msra.mxu1 %v543_v3  ;;  %v549_v9 = vld [vmem:[#allocation5 + $0x18] sm:$0xff]   ;;  %v546_v10 = vld [vmem:[#allocation3 + $0x28] sm:$0xff]   ;;  %v551_v11 = vld [vmem:[#allocation5 + $0x20] sm:$0xff]  }
  0x39   :  { %474 = vmatprep.subr.bf16.mxu0 %v643_v0  ;;  %494 = vmatprep.subr.bf16.mxu1 %v643_v0  ;;  %v548_v12 = vld [vmem:[#allocation3 + $0x30] sm:$0xff]   ;;  %v553_v13 = vld [vmem:[#allocation5 + $0x28] sm:$0xff]   ;;  %v550_v14 = vld [vmem:[#allocation3 + $0x38] sm:$0xff]  }
  0x3a   :  { %v554_v15 = vld [vmem:[#allocation5 + $0x30] sm:$0xff]   ;;  %v552_v16 = vld [vmem:[%s761_s0] sm:$0xff]   ;;  %v555_v17 = vld [vmem:[#allocation5 + $0x38] sm:$0xff]  }
  0x3b   :  { %v556_v18 = vld [vmem:[#allocation7] sm:$0xff]   ;;  %v557_v19 = vld [vmem:[#allocation7 + $0x8] sm:$0xff]   ;;  %v558_v20 = vld [vmem:[#allocation7 + $0x10] sm:$0xff]  }
  0x3c   :  { %475 = vmatpush3.bf16.msra.mxu0 %v540_v2  ;;  %495 = vmatpush3.bf16.msra.mxu1 %v545_v5  ;;  %v559_v21 = vld [vmem:[#allocation7 + $0x18] sm:$0xff]   ;;  %v560_v22 = vld [vmem:[#allocation7 + $0x20] sm:$0xff]   ;;  %v561_v23 = vld [vmem:[#allocation7 + $0x28] sm:$0xff]  }
  0x3d   :  { %476 = vmatprep.subr.bf16.mxu0 %v643_v0  ;;  %496 = vmatprep.subr.bf16.mxu1 %v643_v0  ;;  %v562_v24 = vld [vmem:[#allocation7 + $0x30] sm:$0xff]   ;;  %v563_v25 = vld [vmem:[#allocation7 + $0x38] sm:$0xff]  }
  0x40   :  { %477 = vmatpush3.bf16.msra.mxu0 %v541_v4  ;;  %497 = vmatpush3.bf16.msra.mxu1 %v547_v7 }
  0x41   :  { %478 = vmatprep.subr.bf16.mxu0 %v643_v0  ;;  %498 = vmatprep.subr.bf16.mxu1 %v643_v0 }
  0x44   :  { %479 = vmatpush3.bf16.msra.mxu0 %v542_v6  ;;  %499 = vmatpush3.bf16.msra.mxu1 %v549_v9 }
  0x45   :  { %480 = vmatprep.subr.bf16.mxu0 %v643_v0  ;;  %500 = vmatprep.subr.bf16.mxu1 %v643_v0 }
  0x48   :  { %481 = vmatpush3.bf16.msra.mxu0 %v544_v8  ;;  %501 = vmatpush3.bf16.msra.mxu1 %v551_v11 }
  0x49   :  { %482 = vmatprep.subr.bf16.mxu0 %v643_v0  ;;  %502 = vmatprep.subr.bf16.mxu1 %v643_v0 }
  0x4c   :  { %483 = vmatpush3.bf16.msra.mxu0 %v546_v10  ;;  %503 = vmatpush3.bf16.msra.mxu1 %v553_v13 }
  0x4d   :  { %484 = vmatprep.subr.bf16.mxu0 %v643_v0  ;;  %504 = vmatprep.subr.bf16.mxu1 %v643_v0 }
  0x50   :  { %485 = vmatpush3.bf16.msra.mxu0 %v548_v12  ;;  %505 = vmatpush3.bf16.msra.mxu1 %v554_v15 }
  0x51   :  { %486 = vmatprep.subr.bf16.mxu0 %v643_v0  ;;  %506 = vmatprep.subr.bf16.mxu1 %v643_v0 }
  0x54   :  { %487 = vmatpush3.bf16.msra.mxu0 %v550_v14  ;;  %507 = vmatpush3.bf16.msra.mxu1 %v555_v17 }
  0x55   :  { %512 = vmatprep.subr.bf16.mxu0 %v643_v0 }
  0x57   :  { %489 = vmatmul.mubr.bf16.vlgmr.msra.gmra.mrb[0].mxu0 %v552_v16  ;;  %509 = vmatmul.mubr.bf16.vlgmr.msra.gmra.mrb[0].mxu1 %v552_v16 }
  0x58   :  { %513 = vmatpush3.bf16.msra.mxu0 %v556_v18  ;;  %528 = vmatprep.mubr.msk.bf16.mxu0 %vm644_vm0, %v643_v0 }
  0x59   :  { %514 = vmatprep.subr.bf16.mxu0 %v643_v0 }
  0x5c   :  { %515 = vmatpush3.bf16.msra.mxu0 %v557_v19 }
  0x5d   :  { %516 = vmatprep.subr.bf16.mxu0 %v643_v0 }
  0x60   :  { %517 = vmatpush3.bf16.msra.mxu0 %v558_v20 }
  0x61   :  { %518 = vmatprep.subr.bf16.mxu0 %v643_v0 }
  0x64   :  { %519 = vmatpush3.bf16.msra.mxu0 %v559_v21 }
  0x65   :  { %520 = vmatprep.subr.bf16.mxu0 %v643_v0 }
  0x68   :  { %521 = vmatpush3.bf16.msra.mxu0 %v560_v22 }
  0x69   :  { %522 = vmatprep.subr.bf16.mxu0 %v643_v0 }
  0x6c   :  { %523 = vmatpush3.bf16.msra.mxu0 %v561_v23 }
  0x6d   :  { %524 = vmatprep.subr.bf16.mxu0 %v643_v0 }
  0x70   :  { %525 = vmatpush3.bf16.msra.mxu0 %v562_v24 }
  0x71   :  { %526 = vmatprep.subr.bf16.mxu0 %v643_v0 }
  0x74   :  { %527 = vmatpush3.bf16.msra.mxu0 %v563_v25 }
 0x12a   :  { %v171_v26 = vpop.f32.mrb[0].mxu0  ;;  %v276_v32 = vpop.f32.mrb[0].mxu1 }
 0x12b   :  { %v285_v27 = vmul.f32 0.70710677, %v171_v26  ;;  %v490_v28 = vpop.f32.mrb[1].mxu0  ;;  %v510_v33 = vpop.f32.mrb[1].mxu1  ;;  %v283_v37 = vmul.f32 0.5, %v171_v26 }
 0x12c   :  { %v174_v29 = vpop.f32.mrb[2].mxu0  ;;  %v279_v34 = vpop.f32.mrb[2].mxu1 }
 0x12d   :  { %564 = verf.f32 %v285_v27  ;;  %v286_v30 = vmul.f32 0.70710677, %v174_v29  ;;  %v491_v31 = vpop.f32.mrb[3].mxu0  ;;  %v511_v35 = vpop.f32.mrb[3].mxu1  ;;  %v284_v40 = vmul.f32 0.5, %v174_v29 }
 0x12f   :  { %566 = verf.f32 %v286_v30 }
 0x137   :  { %v565_v36 = vpop.eup %564 }
 0x138   :  { %v289_v38 = vadd.f32 1.0, %v565_v36 }
 0x139   :  { %v567_v39 = vpop.eup %566 }
 0x13a   :  { %v291_v41 = vmul.f32 %v289_v38, %v283_v37  ;;  %v290_v42 = vadd.f32 1.0, %v567_v39 }
 0x13c   :  { %v293_v43 = vmul.f32 %v291_v41, %v276_v32  ;;  %v292_v44 = vmul.f32 %v290_v42, %v284_v40 }
 0x13e   :  { %v294_v45 = vmul.f32 %v292_v44, %v279_v34 }
 0x140   :  { %v295_v46 = vpack.c.bf16 %v294_v45, %v293_v43 }
 0x142   :  { %529 = vmatmul.mubr.bf16.vlgmr.msra.gmra.mrb[4].mxu0 %v295_v46 }
 0x215   :  { %v396_v47 = vpop.f32.mrb[4].mxu0 }
 0x216   :  { %412 = vst [vmem:[%s765_s4] sm:$0xff] %v396_v47  ;;  %v530_v48 = vpop.f32.mrb[5].mxu0 }
 0x217   :  { %v399_v49 = vpop.f32.mrb[6].mxu0 }
 0x218   :  { %413 = vst [vmem:[%s765_s4 + $0x8] sm:$0xff] %v399_v49  ;;  %v531_v50 = vpop.f32.mrb[7].mxu0 }
 0x219   :  { %418 = vsyncpa [#allocation4], 1 }
 0x21a   :  { %419 = vsyncpa [#allocation6], 1 }

// kernel: _forward.1
= control target key start
LH: loop header
LB: loop body
LE: loop exit
PB: predicated region body
PF: predicated region fallthrough
CT: control target
= control target key end

     0   :  { %9 = vsyncpa [#allocation4], 0  ;;  %s761_s0 = inlined_call_operand.vmem [shape: bf16[16,128], index: 0, kind: input, shape index: {}]   ;;  %s762_s1 = inlined_call_operand.hbm [shape: bf16[128,128], index: 1, kind: input, shape index: {}]   ;;  %s763_s2 = inlined_call_operand.hbm [shape: bf16[128,128], index: 2, kind: input, shape index: {}]   ;;  %s764_s3 = inlined_call_operand.hbm [shape: bf16[128,128], index: 3, kind: input, shape index: {}]   ;;  %s765_s4 = inlined_call_operand.vmem [shape: f32[16,128], index: 4, kind: output, shape index: {}]  }
   0x1   :  { %10 = vsyncpa [#allocation6], 0  ;;  %s638_s15 = smov [#allocation5]   ;;  %s639_s17 = smov [#allocation3]  }
   0x2   :  { %s30_s16 = sshll.u32 %s638_s15, 4  ;;  %s18_s18 = sshll.u32 %s639_s17, 4  ;;  %s31_s16 = int_to_ptr.vmem [resolvable:$true] %s30_s16  ;;  %s670_s18 = int_to_ptr.vmem [resolvable:$true] %s18_s18 }
   0x3   :  { %s568_s21 = scalar_lea.hbm %s763_s2, 1024 }
   0x4   :  { %p569_p0 = scmp.ne.s32.totalorder %s763_s2, %s568_s21  ;;  %p572_p1 = scmp.lt.u32.totalorder %s568_s21, %s763_s2 }
   0x6   :  { %p574_p2 = pnand %p572_p1, %p569_p0 }
   0x8   :  { %577 = shalt.err (!%p574_p2)
}
   0x9   :  { %s578_s26 = scalar_lea.vmem %s31_s16, 1024  ;;  %p583_p4 = scmp.lt.s32.totalorder %s31_s16, %s31_s16 }
   0xa   :  { %p579_p3 = scmp.ne.s32.totalorder %s31_s16, %s578_s26  ;;  %p584_p5 = scmp.lt.s32.totalorder %s578_s26, %s578_s26 }
   0xc   :  { %p585_p6 = por %p584_p5, %p583_p4 }
   0xe   :  { %p586_p7 = pnand %p585_p6, %p579_p3 }
  0x10   :  { %589 = shalt.err (!%p586_p7)
}
  0x11   :  { %s640_s27 = smov 64   ;;  %s641_s28 = smov 4  }
  0x12   :  { %36 = dma.hbm_to_vmem [thread:$0]  %s763_s2, 1024, %s31_s16, [#allocation6], %s640_s27, %s640_s27, %s641_s28  }
  0x13   :  { %s590_s7 = scalar_lea.hbm %s762_s1, 1024 }
  0x14   :  { %p591_p8 = scmp.ne.s32.totalorder %s762_s1, %s590_s7  ;;  %p594_p9 = scmp.lt.u32.totalorder %s590_s7, %s762_s1 }
  0x16   :  { %p596_p10 = pnand %p594_p9, %p591_p8 }
  0x18   :  { %599 = shalt.err (!%p596_p10)
}
  0x19   :  { %s600_s12 = scalar_lea.vmem %s670_s18, 1024  ;;  %p605_p12 = scmp.lt.s32.totalorder %s670_s18, %s670_s18 }
  0x1a   :  { %p601_p11 = scmp.ne.s32.totalorder %s670_s18, %s600_s12  ;;  %p606_p13 = scmp.lt.s32.totalorder %s600_s12, %s600_s12 }
  0x1c   :  { %p607_p0 = por %p606_p13, %p605_p12 }
  0x1e   :  { %p608_p1 = pnand %p607_p0, %p601_p11 }
  0x20   :  { %611 = shalt.err (!%p608_p1)
}
  0x21   :  { %24 = dma.hbm_to_vmem [thread:$0]  %s762_s1, 1024, %s670_s18, [#allocation4], %s640_s27, %s640_s27, %s641_s28  }
  0x22   :  { %s642_s14 = smov [#allocation7]   ;;  %s612_s19 = scalar_lea.hbm %s764_s3, 1024 }
  0x23   :  { %s42_s15 = sshll.u32 %s642_s14, 4  ;;  %p613_p2 = scmp.ne.s32.totalorder %s764_s3, %s612_s19  ;;  %s43_s15 = int_to_ptr.vmem [resolvable:$true] %s42_s15 }
  0x24   :  { %p616_p3 = scmp.lt.u32.totalorder %s612_s19, %s764_s3 }
  0x26   :  { %p618_p4 = pnand %p616_p3, %p613_p2 }
  0x28   :  { %621 = shalt.err (!%p618_p4)
}
  0x29   :  { %s622_s24 = scalar_lea.vmem %s43_s15, 1024  ;;  %p627_p6 = scmp.lt.s32.totalorder %s43_s15, %s43_s15 }
  0x2a   :  { %p623_p5 = scmp.ne.s32.totalorder %s43_s15, %s622_s24  ;;  %p628_p7 = scmp.lt.s32.totalorder %s622_s24, %s622_s24 }
  0x2c   :  { %p629_p8 = por %p628_p7, %p627_p6 }
  0x2e   :  { %p630_p9 = pnand %p629_p8, %p623_p5 }
  0x30   :  { %633 = shalt.err (!%p630_p9)
}
  0x31   :  { %48 = dma.hbm_to_vmem [thread:$0]  %s764_s3, 1024, %s43_s15, [#allocation6], %s640_s27, %s640_s27, %s641_s28  }
  0x32   :  { %634 = dma.done.wait [#allocation4], 1024  }
  0x33   :  { %635 = vsyncadd [#allocation4], 4294966272 }
  0x34   :  { %636 = dma.done.wait [#allocation6], 2048  }
  0x35   :  { %637 = vsyncadd [#allocation6], 4294965248  ;;  %v643_v0 = vmov 0.0   ;;  %vm644_vm0 = vmmov 0   ;;  %v539_v1 = vld [vmem:[#allocation3] sm:$0xff]   ;;  %v540_v2 = vld [vmem:[#allocation3 + $0x8] sm:$0xff]  }
  0x36   :  { %472 = vmatprep.subr.bf16.mxu0 %v643_v0  ;;  %492 = vmatprep.subr.bf16.mxu1 %v643_v0  ;;  %v543_v3 = vld [vmem:[#allocation5] sm:$0xff]   ;;  %v541_v4 = vld [vmem:[#allocation3 + $0x10] sm:$0xff]   ;;  %v545_v5 = vld [vmem:[#allocation5 + $0x8] sm:$0xff]  }
  0x37   :  { %488 = vmatprep.mubr.msk.bf16.mxu0 %vm644_vm0, %v643_v0  ;;  %508 = vmatprep.mubr.msk.bf16.mxu1 %vm644_vm0, %v643_v0  ;;  %v542_v6 = vld [vmem:[#allocation3 + $0x18] sm:$0xff]   ;;  %v547_v7 = vld [vmem:[#allocation5 + $0x10] sm:$0xff]   ;;  %v544_v8 = vld [vmem:[#allocation3 + $0x20] sm:$0xff]  }
  0x38   :  { %473 = vmatpush3.bf16.msra.mxu0 %v539_v1  ;;  %493 = vmatpush3.bf16.msra.mxu1 %v543_v3  ;;  %v549_v9 = vld [vmem:[#allocation5 + $0x18] sm:$0xff]   ;;  %v546_v10 = vld [vmem:[#allocation3 + $0x28] sm:$0xff]   ;;  %v551_v11 = vld [vmem:[#allocation5 + $0x20] sm:$0xff]  }
  0x39   :  { %474 = vmatprep.subr.bf16.mxu0 %v643_v0  ;;  %494 = vmatprep.subr.bf16.mxu1 %v643_v0  ;;  %v548_v12 = vld [vmem:[#allocation3 + $0x30] sm:$0xff]   ;;  %v553_v13 = vld [vmem:[#allocation5 + $0x28] sm:$0xff]   ;;  %v550_v14 = vld [vmem:[#allocation3 + $0x38] sm:$0xff]  }
  0x3a   :  { %v554_v15 = vld [vmem:[#allocation5 + $0x30] sm:$0xff]   ;;  %v552_v16 = vld [vmem:[%s761_s0] sm:$0xff]   ;;  %v555_v17 = vld [vmem:[#allocation5 + $0x38] sm:$0xff]  }
  0x3b   :  { %v556_v18 = vld [vmem:[#allocation7] sm:$0xff]   ;;  %v557_v19 = vld [vmem:[#allocation7 + $0x8] sm:$0xff]   ;;  %v558_v20 = vld [vmem:[#allocation7 + $0x10] sm:$0xff]  }
  0x3c   :  { %475 = vmatpush3.bf16.msra.mxu0 %v540_v2  ;;  %495 = vmatpush3.bf16.msra.mxu1 %v545_v5  ;;  %v559_v21 = vld [vmem:[#allocation7 + $0x18] sm:$0xff]   ;;  %v560_v22 = vld [vmem:[#allocation7 + $0x20] sm:$0xff]   ;;  %v561_v23 = vld [vmem:[#allocation7 + $0x28] sm:$0xff]  }
  0x3d   :  { %476 = vmatprep.subr.bf16.mxu0 %v643_v0  ;;  %496 = vmatprep.subr.bf16.mxu1 %v643_v0  ;;  %v562_v24 = vld [vmem:[#allocation7 + $0x30] sm:$0xff]   ;;  %v563_v25 = vld [vmem:[#allocation7 + $0x38] sm:$0xff]  }
  0x40   :  { %477 = vmatpush3.bf16.msra.mxu0 %v541_v4  ;;  %497 = vmatpush3.bf16.msra.mxu1 %v547_v7 }
  0x41   :  { %478 = vmatprep.subr.bf16.mxu0 %v643_v0  ;;  %498 = vmatprep.subr.bf16.mxu1 %v643_v0 }
  0x44   :  { %479 = vmatpush3.bf16.msra.mxu0 %v542_v6  ;;  %499 = vmatpush3.bf16.msra.mxu1 %v549_v9 }
  0x45   :  { %480 = vmatprep.subr.bf16.mxu0 %v643_v0  ;;  %500 = vmatprep.subr.bf16.mxu1 %v643_v0 }
  0x48   :  { %481 = vmatpush3.bf16.msra.mxu0 %v544_v8  ;;  %501 = vmatpush3.bf16.msra.mxu1 %v551_v11 }
  0x49   :  { %482 = vmatprep.subr.bf16.mxu0 %v643_v0  ;;  %502 = vmatprep.subr.bf16.mxu1 %v643_v0 }
  0x4c   :  { %483 = vmatpush3.bf16.msra.mxu0 %v546_v10  ;;  %503 = vmatpush3.bf16.msra.mxu1 %v553_v13 }
  0x4d   :  { %484 = vmatprep.subr.bf16.mxu0 %v643_v0  ;;  %504 = vmatprep.subr.bf16.mxu1 %v643_v0 }
  0x50   :  { %485 = vmatpush3.bf16.msra.mxu0 %v548_v12  ;;  %505 = vmatpush3.bf16.msra.mxu1 %v554_v15 }
  0x51   :  { %486 = vmatprep.subr.bf16.mxu0 %v643_v0  ;;  %506 = vmatprep.subr.bf16.mxu1 %v643_v0 }
  0x54   :  { %487 = vmatpush3.bf16.msra.mxu0 %v550_v14  ;;  %507 = vmatpush3.bf16.msra.mxu1 %v555_v17 }
  0x55   :  { %512 = vmatprep.subr.bf16.mxu0 %v643_v0 }
  0x57   :  { %489 = vmatmul.mubr.bf16.vlgmr.msra.gmra.mrb[0].mxu0 %v552_v16  ;;  %509 = vmatmul.mubr.bf16.vlgmr.msra.gmra.mrb[0].mxu1 %v552_v16 }
  0x58   :  { %513 = vmatpush3.bf16.msra.mxu0 %v556_v18  ;;  %528 = vmatprep.mubr.msk.bf16.mxu0 %vm644_vm0, %v643_v0 }
  0x59   :  { %514 = vmatprep.subr.bf16.mxu0 %v643_v0 }
  0x5c   :  { %515 = vmatpush3.bf16.msra.mxu0 %v557_v19 }
  0x5d   :  { %516 = vmatprep.subr.bf16.mxu0 %v643_v0 }
  0x60   :  { %517 = vmatpush3.bf16.msra.mxu0 %v558_v20 }
  0x61   :  { %518 = vmatprep.subr.bf16.mxu0 %v643_v0 }
  0x64   :  { %519 = vmatpush3.bf16.msra.mxu0 %v559_v21 }
  0x65   :  { %520 = vmatprep.subr.bf16.mxu0 %v643_v0 }
  0x68   :  { %521 = vmatpush3.bf16.msra.mxu0 %v560_v22 }
  0x69   :  { %522 = vmatprep.subr.bf16.mxu0 %v643_v0 }
  0x6c   :  { %523 = vmatpush3.bf16.msra.mxu0 %v561_v23 }
  0x6d   :  { %524 = vmatprep.subr.bf16.mxu0 %v643_v0 }
  0x70   :  { %525 = vmatpush3.bf16.msra.mxu0 %v562_v24 }
  0x71   :  { %526 = vmatprep.subr.bf16.mxu0 %v643_v0 }
  0x74   :  { %527 = vmatpush3.bf16.msra.mxu0 %v563_v25 }
 0x12a   :  { %v171_v26 = vpop.f32.mrb[0].mxu0  ;;  %v276_v32 = vpop.f32.mrb[0].mxu1 }
 0x12b   :  { %v285_v27 = vmul.f32 0.70710677, %v171_v26  ;;  %v490_v28 = vpop.f32.mrb[1].mxu0  ;;  %v510_v33 = vpop.f32.mrb[1].mxu1  ;;  %v283_v37 = vmul.f32 0.5, %v171_v26 }
 0x12c   :  { %v174_v29 = vpop.f32.mrb[2].mxu0  ;;  %v279_v34 = vpop.f32.mrb[2].mxu1 }
 0x12d   :  { %564 = verf.f32 %v285_v27  ;;  %v286_v30 = vmul.f32 0.70710677, %v174_v29  ;;  %v491_v31 = vpop.f32.mrb[3].mxu0  ;;  %v511_v35 = vpop.f32.mrb[3].mxu1  ;;  %v284_v40 = vmul.f32 0.5, %v174_v29 }
 0x12f   :  { %566 = verf.f32 %v286_v30 }
 0x137   :  { %v565_v36 = vpop.eup %564 }
 0x138   :  { %v289_v38 = vadd.f32 1.0, %v565_v36 }
 0x139   :  { %v567_v39 = vpop.eup %566 }
 0x13a   :  { %v291_v41 = vmul.f32 %v289_v38, %v283_v37  ;;  %v290_v42 = vadd.f32 1.0, %v567_v39 }
 0x13c   :  { %v293_v43 = vmul.f32 %v291_v41, %v276_v32  ;;  %v292_v44 = vmul.f32 %v290_v42, %v284_v40 }
 0x13e   :  { %v294_v45 = vmul.f32 %v292_v44, %v279_v34 }
 0x140   :  { %v295_v46 = vpack.c.bf16 %v294_v45, %v293_v43 }
 0x142   :  { %529 = vmatmul.mubr.bf16.vlgmr.msra.gmra.mrb[4].mxu0 %v295_v46 }
 0x215   :  { %v396_v47 = vpop.f32.mrb[4].mxu0 }
 0x216   :  { %412 = vst [vmem:[%s765_s4] sm:$0xff] %v396_v47  ;;  %v530_v48 = vpop.f32.mrb[5].mxu0 }
 0x217   :  { %v399_v49 = vpop.f32.mrb[6].mxu0 }
 0x218   :  { %413 = vst [vmem:[%s765_s4 + $0x8] sm:$0xff] %v399_v49  ;;  %v531_v50 = vpop.f32.mrb[7].mxu0 }
 0x219   :  { %418 = vsyncpa [#allocation4], 1 }
 0x21a   :  { %419 = vsyncpa [#allocation6], 1 }

</bundles_post_ra>
